<compile_context>
chip_gen: v7x
topology: tpu7x:2x2x1
jax: 0.10.0
libtpu: 0.0.40
codegen_flags: <defaults>
</compile_context>

<pallas_src>
import functools

import jax
import jax.numpy as jnp
from jax.experimental import pallas as pl
from jax.experimental.pallas import tpu as pltpu

# 32 MiB scoped VMEM: raises v5e's 16 MiB default, matches v6e/v7x defaults and
# leaves plenty of headroom on v7x's 64 MiB physical VMEM. Actual per-step tile
# usage of these kernels is well under 2 MiB.
_VMEM_LIMIT_BYTES = 32 * 1024 * 1024


def _round_up(x, m):
    return ((x + m - 1) // m) * m


# ----------------------------------------------------------------------------
# Kernel 1: tiled  out = relu(x @ w + b)   (used for the conv GEMMs)
# ----------------------------------------------------------------------------
def _matmul_bias_relu_kernel(x_ref, w_ref, b_ref, o_ref):
    # bf16 x bf16 -> f32 accumulation on the MXU; epilogue in f32.
    z = jnp.dot(x_ref[...], w_ref[...], preferred_element_type=jnp.float32)
    z = jnp.maximum(z + b_ref[...], 0.0)
    o_ref[...] = z.astype(o_ref.dtype)


def pallas_matmul_bias_relu(x, w, b, *, block_m=256, out_dtype=jnp.bfloat16):
    """x: (M, K), w: (K, N) bf16, b: (1, N) f32 -> (M, N) out_dtype.

    The grid tiles M only (K <= 576 and N <= 64 for this net, so the weight and
    bias stay fully VMEM-resident and are auto double-buffered by Pallas).
    """
    M, K = x.shape
    N = w.shape[1]
    x = x.astype(jnp.bfloat16)

    tm = min(block_m, _round_up(M, 8))          # (8,128)-friendly row tile
    m_pad = _round_up(M, tm)
    if m_pad != M:
        x = jnp.pad(x, ((0, m_pad - M), (0, 0)))  # zero rows, sliced off below

    out = pl.pallas_call(
        _matmul_bias_relu_kernel,
        out_shape=jax.ShapeDtypeStruct((m_pad, N), out_dtype),
        grid=(m_pad // tm,),
        in_specs=[
            pl.BlockSpec((tm, K), lambda i: (i, 0)),   # patches row tile
            pl.BlockSpec((K, N), lambda i: (0, 0)),    # full weight, VMEM-resident
            pl.BlockSpec((1, N), lambda i: (0, 0)),    # bias
        ],
        out_specs=pl.BlockSpec((tm, N), lambda i: (i, 0)),
        compiler_params=pltpu.CompilerParams(
            dimension_semantics=("parallel",),         # v7x: shard rows over 2 TCs
            vmem_limit_bytes=_VMEM_LIMIT_BYTES,
        ),
    )(x, w.astype(jnp.bfloat16), b.astype(jnp.float32))
    return out[:M] if m_pad != M else out


# ----------------------------------------------------------------------------
# Kernel 2: fused FC stack  (actor trunk + 6 heads, critic trunk + value)
# ----------------------------------------------------------------------------
def _fc_heads_kernel(f_ref, w1_ref, b1_ref, w2_ref, b2_ref, w3_ref, b3_ref, o_ref):
    # Layer 1: actor_fc1 | critic_fc1 concatenated -> one pass over conv_out.
    t1 = jnp.dot(f_ref[...], w1_ref[...], preferred_element_type=jnp.float32)
    t1 = jnp.maximum(t1 + b1_ref[...], 0.0)                      # (B, 2H)
    # Layer 2: block-diagonal [[actor_fc2, 0], [0, critic_fc2]].
    t2 = jnp.dot(t1.astype(jnp.bfloat16), w2_ref[...],
                 preferred_element_type=jnp.float32)
    t2 = jnp.maximum(t2 + b2_ref[...], 0.0)                      # (B, 2H)
    # Layer 3: [6 heads | value | pad] -> (B, 8).
    z = jnp.dot(t2.astype(jnp.bfloat16), w3_ref[...],
                preferred_element_type=jnp.float32) + b3_ref[...]
    # Per-column activations:
    #   0: tanh(mu_steer)        1: softplus+1e-3 (sigma_steer)
    #   2: sigmoid(mu_throttle)  3: softplus+1e-3 (sigma_throttle)
    #   4: sigmoid(mu_brake)     5: softplus+1e-3 (sigma_brake)
    #   6: value (identity)      7: padding (identity, dropped outside)
    col = jax.lax.broadcasted_iota(jnp.int32, z.shape, 1)
    act = jnp.where(col == 0, jnp.tanh(z),
          jnp.where((col == 2) | (col == 4), jax.nn.sigmoid(z),
          jnp.where(col >= 6, z, jax.nn.softplus(z) + 0.001)))
    o_ref[...] = act.astype(o_ref.dtype)


def pallas_fc_heads(conv_out, p):
    """conv_out: (B, F) -> (B, 8) = [6 head outputs, value, pad]."""
    B = conv_out.shape[0]
    return pl.pallas_call(
        _fc_heads_kernel,
        out_shape=jax.ShapeDtypeStruct((B, 8), jnp.float32),
        compiler_params=pltpu.CompilerParams(vmem_limit_bytes=_VMEM_LIMIT_BYTES),
    )(conv_out.astype(jnp.bfloat16),
      p["fc_w1"], p["fc_b1"], p["fc_w2"], p["fc_b2"], p["fc_w3"], p["fc_b3"])


# ----------------------------------------------------------------------------
# Conv2d (valid, square kernel, stride) = im2col (JAX glue) + tiled Pallas GEMM
# ----------------------------------------------------------------------------
def _im2col(x_nhwc, K, S):
    """(B,H,W,C) bf16 -> (B*OH*OW, K*K*C) patches; column order (kh, kw, ci)."""
    B, H, W, C = x_nhwc.shape
    OH = (H - K) // S + 1
    OW = (W - K) // S + 1
    cols = []
    for kh in range(K):
        for kw in range(K):
            cols.append(x_nhwc[:, kh:kh + S * (OH - 1) + 1:S,
                               kw:kw + S * (OW - 1) + 1:S, :])
    patches = jnp.stack(cols, axis=3)                 # (B, OH, OW, K*K, C)
    return patches.reshape(B * OH * OW, K * K * C), (B, OH, OW)


def conv2d_relu(x_nhwc, w_mat, b, *, K, S):
    """w_mat: pre-transposed (K*K*Ci, Co) bf16; b: (1, Co) f32. Returns NHWC bf16."""
    # TODO(synk): replace the im2col patch materialization with an in-kernel
    # (kh, kw) accumulation over strided VMEM slices to remove the 4-9x patch
    # duplication in HBM; kept as plain-JAX glue here for lowering robustness.
    Co = w_mat.shape[1]
    patches, (B, OH, OW) = _im2col(x_nhwc.astype(jnp.bfloat16), K, S)
    out = pallas_matmul_bias_relu(patches, w_mat, b)  # (B*OH*OW, Co) bf16
    return out.reshape(B, OH, OW, Co)


# ----------------------------------------------------------------------------
# Parameter construction (PyTorch-default-style uniform init, packed for Pallas)
# ----------------------------------------------------------------------------
def _uniform(key, shape, fan_in):
    bound = 1.0 / jnp.sqrt(jnp.float32(fan_in))
    return jax.random.uniform(key, shape, jnp.float32, -bound, bound)


def conv_output_hw(h, w):
    h1, w1 = (h - 8) // 4 + 1, (w - 8) // 4 + 1
    h2, w2 = (h1 - 4) // 2 + 1, (w1 - 4) // 2 + 1
    h3, w3 = (h2 - 3) // 1 + 1, (w2 - 3) // 1 + 1
    return h3, w3


def init_params(key, input_dims, hidden_dims):
    c_in, h, w = input_dims
    h3, w3 = conv_output_hw(h, w)
    F = 64 * h3 * w3          # conv_output_size (nn.Flatten on NCHW)
    H = hidden_dims

    keys = iter(jax.random.split(key, 32))   # 28 consumed; extra is harmless
    nk = lambda: next(keys)

    p = {}

    def conv_layer(name, co, ci, K):
        fan = ci * K * K
        w_oikk = _uniform(nk(), (co, ci, K, K), fan)       # PyTorch (Co,Ci,K,K)
        b_ = _uniform(nk(), (co,), fan)
        # Pre-transpose once at init to match im2col's (kh, kw, ci) ordering.
        p[name + "_w"] = (jnp.transpose(w_oikk, (2, 3, 1, 0))
                          .reshape(K * K * ci, co).astype(jnp.bfloat16))
        p[name + "_b"] = b_.reshape(1, co).astype(jnp.float32)

    conv_layer("conv1", 32, c_in, 8)
    conv_layer("conv2", 64, 32, 4)
    conv_layer("conv3", 64, 64, 3)

    # FC weights initialized in the PyTorch convention (rows indexed by the
    # channel-major NCHW flatten).
    a1_w = _uniform(nk(), (F, H), F); a1_b = _uniform(nk(), (H,), F)
    a2_w = _uniform(nk(), (H, H), H); a2_b = _uniform(nk(), (H,), H)
    head_ws, head_bs = [], []
    for _ in range(6):
        head_ws.append(_uniform(nk(), (H, 1), H))
        head_bs.append(_uniform(nk(), (1,), H))
    c1_w = _uniform(nk(), (F, H), F); c1_b = _uniform(nk(), (H,), F)
    c2_w = _uniform(nk(), (H, H), H); c2_b = _uniform(nk(), (H,), H)
    c3_w = _uniform(nk(), (H, 1), H); c3_b = _uniform(nk(), (1,), H)

    # Absorb the channel-major flatten into the first FC layers' rows so the
    # forward flattens the NHWC conv output directly (no per-step transpose).
    perm = jnp.transpose(jnp.arange(F).reshape(64, h3, w3), (1, 2, 0)).reshape(-1)
    a1_w = a1_w[perm]
    c1_w = c1_w[perm]

    # Pack the whole FC stack for the single fused kernel.
    p["fc_w1"] = jnp.concatenate([a1_w, c1_w], axis=1).astype(jnp.bfloat16)  # (F, 2H)
    p["fc_b1"] = jnp.concatenate([a1_b, c1_b]).reshape(1, 2 * H).astype(jnp.float32)

    w2 = jnp.zeros((2 * H, 2 * H), jnp.float32)
    w2 = w2.at[:H, :H].set(a2_w).at[H:, H:].set(c2_w)                        # block-diag
    p["fc_w2"] = w2.astype(jnp.bfloat16)
    p["fc_b2"] = jnp.concatenate([a2_b, c2_b]).reshape(1, 2 * H).astype(jnp.float32)

    w3 = jnp.zeros((2 * H, 8), jnp.float32)
    w3 = w3.at[:H, 0:6].set(jnp.concatenate(head_ws, axis=1))                # heads <- actor
    w3 = w3.at[H:, 6:7].set(c3_w)                                            # value <- critic
    p["fc_w3"] = w3.astype(jnp.bfloat16)
    b3 = jnp.zeros((8,), jnp.float32)
    b3 = b3.at[0:6].set(jnp.concatenate(head_bs)).at[6].set(c3_b[0])
    p["fc_b3"] = b3.reshape(1, 8)
    return p


# ----------------------------------------------------------------------------
# Forward pass (matches ActorCriticNetwork.forward)
# ----------------------------------------------------------------------------
def actor_critic_forward(params, state_nchw):
    # NCHW (PyTorch) -> NHWC once at the boundary; bf16 feeds the MXU path.
    x = jnp.transpose(state_nchw.astype(jnp.bfloat16), (0, 2, 3, 1))
    x = conv2d_relu(x, params["conv1_w"], params["conv1_b"], K=8, S=4)
    x = conv2d_relu(x, params["conv2_w"], params["conv2_b"], K=4, S=2)
    x = conv2d_relu(x, params["conv3_w"], params["conv3_b"], K=3, S=1)
    B = x.shape[0]
    conv_out = x.reshape(B, -1)      # NHWC flatten; fc_w1/fc rows pre-permuted

    out8 = pallas_fc_heads(conv_out, params)         # (B, 8) f32
    mu_steer, sigma_steer = out8[:, 0:1], out8[:, 1:2]
    mu_throttle, sigma_throttle = out8[:, 2:3], out8[:, 3:4]
    mu_brake, sigma_brake = out8[:, 4:5], out8[:, 5:6]
    value = out8[:, 6:7]
    return ((mu_steer, sigma_steer),
            (mu_throttle, sigma_throttle),
            (mu_brake, sigma_brake),
            value)


if __name__ == "__main__":
    # Small shapes consistent with the module: batch=2, 4 stacked frames, 36x36
    # (36 -> conv1 8 -> conv2 3 -> conv3 1, so conv_output_size = 64).
    batch = 2
    input_dims = (4, 36, 36)
    hidden_dims = 32

    key = jax.random.PRNGKey(0)
    pkey, xkey = jax.random.split(key)
    params = init_params(pkey, input_dims, hidden_dims)
    state = jax.random.normal(xkey, (batch,) + input_dims, dtype=jnp.float32)

    fwd = jax.jit(actor_critic_forward)
    out = jax.block_until_ready(fwd(params, state))

    ((mu_s, sg_s), (mu_t, sg_t), (mu_b, sg_b), value) = out
    assert mu_s.shape == (batch, 1) and sg_s.shape == (batch, 1)
    assert mu_t.shape == (batch, 1) and sg_t.shape == (batch, 1)
    assert mu_b.shape == (batch, 1) and sg_b.shape == (batch, 1)
    assert value.shape == (batch, 1)
    # sanity: sigmas strictly positive (softplus + 1e-3), mus finite
    assert bool(jnp.all(sg_s > 0)) and bool(jnp.all(sg_t > 0)) and bool(jnp.all(sg_b > 0))
    assert bool(jnp.all(jnp.isfinite(value)))
    print("KERNEL_OK")
</pallas_src>

<mosaic_0001>
module attributes {stable_mosaic.version = 11 : i64} {
  func.func @_matmul_bias_relu_kernel(%arg0: i32, %arg1: memref<128x256xbf16, #tpu.memory_space<vmem>>, %arg2: memref<256x32xbf16, #tpu.memory_space<vmem>>, %arg3: memref<1x32xf32, #tpu.memory_space<vmem>>, %arg4: memref<128x32xbf16, #tpu.memory_space<vmem>>) attributes {dimension_semantics = [#tpu.dimension_semantics<parallel>], iteration_bounds = array<i64: 1>, scalar_prefetch = 0 : i64, scratch_operands = 0 : i64, tpu.core_type = #tpu.core_type<tc>, window_params = [{transform_indices = @transform_0, window_bounds = array<i64: 128, 256>}, {pipeline_mode = #tpu.pipeline_mode<synchronous>, transform_indices = @transform_1, window_bounds = array<i64: 256, 32>}, {pipeline_mode = #tpu.pipeline_mode<synchronous>, transform_indices = @transform_2, window_bounds = array<i64: 1, 32>}, {transform_indices = @transform_3, window_bounds = array<i64: 128, 32>}]} {
    %c0 = arith.constant 0 : index
    %c0_0 = arith.constant 0 : index
    %0 = vector.load %arg1[%c0, %c0_0] : memref<128x256xbf16, #tpu.memory_space<vmem>>, vector<128x256xbf16>
    %c0_1 = arith.constant 0 : index
    %c0_2 = arith.constant 0 : index
    %1 = vector.load %arg2[%c0_1, %c0_2] : memref<256x32xbf16, #tpu.memory_space<vmem>>, vector<256x32xbf16>
    %cst = arith.constant dense<0.000000e+00> : vector<128x32xf32>
    %2 = tpu.matmul %0, %1, %cst {dimension_numbers = #tpu.dot_dimension_numbers<[1], [0], [0], [1], [0, 0, 1, 1], [], []>} : vector<128x256xbf16>, vector<256x32xbf16>, vector<128x32xf32> -> vector<128x32xf32>
    %c0_3 = arith.constant 0 : index
    %c0_4 = arith.constant 0 : index
    %3 = vector.load %arg3[%c0_3, %c0_4] : memref<1x32xf32, #tpu.memory_space<vmem>>, vector<1x32xf32>
    %4 = vector.broadcast %3 : vector<1x32xf32> to vector<128x32xf32>
    %5 = arith.addf %2, %4 : vector<128x32xf32>
    %cst_5 = arith.constant 0.000000e+00 : f32
    %6 = vector.broadcast %cst_5 : f32 to vector<128x32xf32>
    %7 = arith.maximumf %5, %6 : vector<128x32xf32>
    %8 = arith.truncf %7 : vector<128x32xf32> to vector<128x32xbf16>
    %c0_6 = arith.constant 0 : index
    %c0_7 = arith.constant 0 : index
    %9 = vector.load %arg4[%c0_6, %c0_7] : memref<128x32xbf16, #tpu.memory_space<vmem>>, vector<128x32xbf16>
    tpu.vector_store %arg4[%c0_6, %c0_7], %8 {strides = array<i32>} : memref<128x32xbf16, #tpu.memory_space<vmem>>, vector<128x32xbf16>,
    return
  }
  func.func @transform_0(%arg0: i32) -> (i32, i32) {
    %c0_i32 = arith.constant 0 : i32
    %c0_i32_0 = arith.constant 0 : i32
    return %arg0, %c0_i32 : i32, i32
  }
  func.func @transform_1(%arg0: i32) -> (i32, i32) {
    %c0_i32 = arith.constant 0 : i32
    %c0_i32_0 = arith.constant 0 : i32
    %c0_i32_1 = arith.constant 0 : i32
    return %c0_i32, %c0_i32_0 : i32, i32
  }
  func.func @transform_2(%arg0: i32) -> (i32, i32) {
    %c0_i32 = arith.constant 0 : i32
    %c0_i32_0 = arith.constant 0 : i32
    %c0_i32_1 = arith.constant 0 : i32
    return %c0_i32, %c0_i32_0 : i32, i32
  }
  func.func @transform_3(%arg0: i32) -> (i32, i32) {
    %c0_i32 = arith.constant 0 : i32
    %c0_i32_0 = arith.constant 0 : i32
    return %arg0, %c0_i32 : i32, i32
  }
}

module attributes {stable_mosaic.version = 11 : i64} {
  func.func @_matmul_bias_relu_kernel(%arg0: i32, %arg1: memref<24x512xbf16, #tpu.memory_space<vmem>>, %arg2: memref<512x64xbf16, #tpu.memory_space<vmem>>, %arg3: memref<1x64xf32, #tpu.memory_space<vmem>>, %arg4: memref<24x64xbf16, #tpu.memory_space<vmem>>) attributes {dimension_semantics = [#tpu.dimension_semantics<parallel>], iteration_bounds = array<i64: 1>, scalar_prefetch = 0 : i64, scratch_operands = 0 : i64, tpu.core_type = #tpu.core_type<tc>, window_params = [{transform_indices = @transform_0, window_bounds = array<i64: 24, 512>}, {pipeline_mode = #tpu.pipeline_mode<synchronous>, transform_indices = @transform_1, window_bounds = array<i64: 512, 64>}, {pipeline_mode = #tpu.pipeline_mode<synchronous>, transform_indices = @transform_2, window_bounds = array<i64: 1, 64>}, {transform_indices = @transform_3, window_bounds = array<i64: 24, 64>}]} {
    %c0 = arith.constant 0 : index
    %c0_0 = arith.constant 0 : index
    %0 = vector.load %arg1[%c0, %c0_0] : memref<24x512xbf16, #tpu.memory_space<vmem>>, vector<24x512xbf16>
    %c0_1 = arith.constant 0 : index
    %c0_2 = arith.constant 0 : index
    %1 = vector.load %arg2[%c0_1, %c0_2] : memref<512x64xbf16, #tpu.memory_space<vmem>>, vector<512x64xbf16>
    %cst = arith.constant dense<0.000000e+00> : vector<24x64xf32>
    %2 = tpu.matmul %0, %1, %cst {dimension_numbers = #tpu.dot_dimension_numbers<[1], [0], [0], [1], [0, 0, 1, 1], [], []>} : vector<24x512xbf16>, vector<512x64xbf16>, vector<24x64xf32> -> vector<24x64xf32>
    %c0_3 = arith.constant 0 : index
    %c0_4 = arith.constant 0 : index
    %3 = vector.load %arg3[%c0_3, %c0_4] : memref<1x64xf32, #tpu.memory_space<vmem>>, vector<1x64xf32>
    %4 = vector.broadcast %3 : vector<1x64xf32> to vector<24x64xf32>
    %5 = arith.addf %2, %4 : vector<24x64xf32>
    %cst_5 = arith.constant 0.000000e+00 : f32
    %6 = vector.broadcast %cst_5 : f32 to vector<24x64xf32>
    %7 = arith.maximumf %5, %6 : vector<24x64xf32>
    %8 = arith.truncf %7 : vector<24x64xf32> to vector<24x64xbf16>
    %c0_6 = arith.constant 0 : index
    %c0_7 = arith.constant 0 : index
    %9 = vector.load %arg4[%c0_6, %c0_7] : memref<24x64xbf16, #tpu.memory_space<vmem>>, vector<24x64xbf16>
    tpu.vector_store %arg4[%c0_6, %c0_7], %8 {strides = array<i32>} : memref<24x64xbf16, #tpu.memory_space<vmem>>, vector<24x64xbf16>,
    return
  }
  func.func @transform_0(%arg0: i32) -> (i32, i32) {
    %c0_i32 = arith.constant 0 : i32
    %c0_i32_0 = arith.constant 0 : i32
    return %arg0, %c0_i32 : i32, i32
  }
  func.func @transform_1(%arg0: i32) -> (i32, i32) {
    %c0_i32 = arith.constant 0 : i32
    %c0_i32_0 = arith.constant 0 : i32
    %c0_i32_1 = arith.constant 0 : i32
    return %c0_i32, %c0_i32_0 : i32, i32
  }
  func.func @transform_2(%arg0: i32) -> (i32, i32) {
    %c0_i32 = arith.constant 0 : i32
    %c0_i32_0 = arith.constant 0 : i32
    %c0_i32_1 = arith.constant 0 : i32
    return %c0_i32, %c0_i32_0 : i32, i32
  }
  func.func @transform_3(%arg0: i32) -> (i32, i32) {
    %c0_i32 = arith.constant 0 : i32
    %c0_i32_0 = arith.constant 0 : i32
    return %arg0, %c0_i32 : i32, i32
  }
}

module attributes {stable_mosaic.version = 11 : i64} {
  func.func @_matmul_bias_relu_kernel(%arg0: i32, %arg1: memref<8x576xbf16, #tpu.memory_space<vmem>>, %arg2: memref<576x64xbf16, #tpu.memory_space<vmem>>, %arg3: memref<1x64xf32, #tpu.memory_space<vmem>>, %arg4: memref<8x64xbf16, #tpu.memory_space<vmem>>) attributes {dimension_semantics = [#tpu.dimension_semantics<parallel>], iteration_bounds = array<i64: 1>, scalar_prefetch = 0 : i64, scratch_operands = 0 : i64, tpu.core_type = #tpu.core_type<tc>, window_params = [{transform_indices = @transform_0, window_bounds = array<i64: 8, 576>}, {pipeline_mode = #tpu.pipeline_mode<synchronous>, transform_indices = @transform_1, window_bounds = array<i64: 576, 64>}, {pipeline_mode = #tpu.pipeline_mode<synchronous>, transform_indices = @transform_2, window_bounds = array<i64: 1, 64>}, {transform_indices = @transform_3, window_bounds = array<i64: 8, 64>}]} {
    %c0 = arith.constant 0 : index
    %c0_0 = arith.constant 0 : index
    %0 = vector.load %arg1[%c0, %c0_0] : memref<8x576xbf16, #tpu.memory_space<vmem>>, vector<8x576xbf16>
    %c0_1 = arith.constant 0 : index
    %c0_2 = arith.constant 0 : index
    %1 = vector.load %arg2[%c0_1, %c0_2] : memref<576x64xbf16, #tpu.memory_space<vmem>>, vector<576x64xbf16>
    %cst = arith.constant dense<0.000000e+00> : vector<8x64xf32>
    %2 = tpu.matmul %0, %1, %cst {dimension_numbers = #tpu.dot_dimension_numbers<[1], [0], [0], [1], [0, 0, 1, 1], [], []>} : vector<8x576xbf16>, vector<576x64xbf16>, vector<8x64xf32> -> vector<8x64xf32>
    %c0_3 = arith.constant 0 : index
    %c0_4 = arith.constant 0 : index
    %3 = vector.load %arg3[%c0_3, %c0_4] : memref<1x64xf32, #tpu.memory_space<vmem>>, vector<1x64xf32>
    %4 = vector.broadcast %3 : vector<1x64xf32> to vector<8x64xf32>
    %5 = arith.addf %2, %4 : vector<8x64xf32>
    %cst_5 = arith.constant 0.000000e+00 : f32
    %6 = vector.broadcast %cst_5 : f32 to vector<8x64xf32>
    %7 = arith.maximumf %5, %6 : vector<8x64xf32>
    %8 = arith.truncf %7 : vector<8x64xf32> to vector<8x64xbf16>
    %c0_6 = arith.constant 0 : index
    %c0_7 = arith.constant 0 : index
    %9 = vector.load %arg4[%c0_6, %c0_7] : memref<8x64xbf16, #tpu.memory_space<vmem>>, vector<8x64xbf16>
    tpu.vector_store %arg4[%c0_6, %c0_7], %8 {strides = array<i32>} : memref<8x64xbf16, #tpu.memory_space<vmem>>, vector<8x64xbf16>,
    return
  }
  func.func @transform_0(%arg0: i32) -> (i32, i32) {
    %c0_i32 = arith.constant 0 : i32
    %c0_i32_0 = arith.constant 0 : i32
    return %arg0, %c0_i32 : i32, i32
  }
  func.func @transform_1(%arg0: i32) -> (i32, i32) {
    %c0_i32 = arith.constant 0 : i32
    %c0_i32_0 = arith.constant 0 : i32
    %c0_i32_1 = arith.constant 0 : i32
    return %c0_i32, %c0_i32_0 : i32, i32
  }
  func.func @transform_2(%arg0: i32) -> (i32, i32) {
    %c0_i32 = arith.constant 0 : i32
    %c0_i32_0 = arith.constant 0 : i32
    %c0_i32_1 = arith.constant 0 : i32
    return %c0_i32, %c0_i32_0 : i32, i32
  }
  func.func @transform_3(%arg0: i32) -> (i32, i32) {
    %c0_i32 = arith.constant 0 : i32
    %c0_i32_0 = arith.constant 0 : i32
    return %arg0, %c0_i32 : i32, i32
  }
}

module attributes {stable_mosaic.version = 11 : i64} {
  func.func @_fc_heads_kernel(%arg0: memref<2x64xbf16, #tpu.memory_space<vmem>>, %arg1: memref<64x64xbf16, #tpu.memory_space<vmem>>, %arg2: memref<1x64xf32, #tpu.memory_space<vmem>>, %arg3: memref<64x64xbf16, #tpu.memory_space<vmem>>, %arg4: memref<1x64xf32, #tpu.memory_space<vmem>>, %arg5: memref<64x8xbf16, #tpu.memory_space<vmem>>, %arg6: memref<1x8xf32, #tpu.memory_space<vmem>>, %arg7: memref<2x8xf32, #tpu.memory_space<vmem>>) attributes {dimension_semantics = [], scalar_prefetch = 0 : i64, scratch_operands = 0 : i64, tpu.core_type = #tpu.core_type<tc>} {
    %c0 = arith.constant 0 : index
    %c0_0 = arith.constant 0 : index
    %0 = vector.load %arg0[%c0, %c0_0] : memref<2x64xbf16, #tpu.memory_space<vmem>>, vector<2x64xbf16>
    %c0_1 = arith.constant 0 : index
    %c0_2 = arith.constant 0 : index
    %1 = vector.load %arg1[%c0_1, %c0_2] : memref<64x64xbf16, #tpu.memory_space<vmem>>, vector<64x64xbf16>
    %cst = arith.constant dense<0.000000e+00> : vector<2x64xf32>
    %2 = tpu.matmul %0, %1, %cst {dimension_numbers = #tpu.dot_dimension_numbers<[1], [0], [0], [1], [0, 0, 1, 1], [], []>} : vector<2x64xbf16>, vector<64x64xbf16>, vector<2x64xf32> -> vector<2x64xf32>
    %c0_3 = arith.constant 0 : index
    %c0_4 = arith.constant 0 : index
    %3 = vector.load %arg2[%c0_3, %c0_4] : memref<1x64xf32, #tpu.memory_space<vmem>>, vector<1x64xf32>
    %4 = vector.broadcast %3 : vector<1x64xf32> to vector<2x64xf32>
    %5 = arith.addf %2, %4 : vector<2x64xf32>
    %cst_5 = arith.constant 0.000000e+00 : f32
    %6 = vector.broadcast %cst_5 : f32 to vector<2x64xf32>
    %7 = arith.maximumf %5, %6 : vector<2x64xf32>
    %8 = arith.truncf %7 : vector<2x64xf32> to vector<2x64xbf16>
    %c0_6 = arith.constant 0 : index
    %c0_7 = arith.constant 0 : index
    %9 = vector.load %arg3[%c0_6, %c0_7] : memref<64x64xbf16, #tpu.memory_space<vmem>>, vector<64x64xbf16>
    %cst_8 = arith.constant dense<0.000000e+00> : vector<2x64xf32>
    %10 = tpu.matmul %8, %9, %cst_8 {dimension_numbers = #tpu.dot_dimension_numbers<[1], [0], [0], [1], [0, 0, 1, 1], [], []>} : vector<2x64xbf16>, vector<64x64xbf16>, vector<2x64xf32> -> vector<2x64xf32>
    %c0_9 = arith.constant 0 : index
    %c0_10 = arith.constant 0 : index
    %11 = vector.load %arg4[%c0_9, %c0_10] : memref<1x64xf32, #tpu.memory_space<vmem>>, vector<1x64xf32>
    %12 = vector.broadcast %11 : vector<1x64xf32> to vector<2x64xf32>
    %13 = arith.addf %10, %12 : vector<2x64xf32>
    %cst_11 = arith.constant 0.000000e+00 : f32
    %14 = vector.broadcast %cst_11 : f32 to vector<2x64xf32>
    %15 = arith.maximumf %13, %14 : vector<2x64xf32>
    %16 = arith.truncf %15 : vector<2x64xf32> to vector<2x64xbf16>
    %c0_12 = arith.constant 0 : index
    %c0_13 = arith.constant 0 : index
    %17 = vector.load %arg5[%c0_12, %c0_13] : memref<64x8xbf16, #tpu.memory_space<vmem>>, vector<64x8xbf16>
    %cst_14 = arith.constant dense<0.000000e+00> : vector<2x8xf32>
    %18 = tpu.matmul %16, %17, %cst_14 {dimension_numbers = #tpu.dot_dimension_numbers<[1], [0], [0], [1], [0, 0, 1, 1], [], []>} : vector<2x64xbf16>, vector<64x8xbf16>, vector<2x8xf32> -> vector<2x8xf32>
    %c0_15 = arith.constant 0 : index
    %c0_16 = arith.constant 0 : index
    %19 = vector.load %arg6[%c0_15, %c0_16] : memref<1x8xf32, #tpu.memory_space<vmem>>, vector<1x8xf32>
    %20 = vector.broadcast %19 : vector<1x8xf32> to vector<2x8xf32>
    %21 = arith.addf %18, %20 : vector<2x8xf32>
    %22 = tpu.iota {dimensions = array<i32: 1>} : vector<2x8xi32>
    %c0_i32 = arith.constant 0 : i32
    %23 = vector.broadcast %c0_i32 : i32 to vector<2x8xi32>
    %24 = arith.cmpi eq, %22, %23 : vector<2x8xi32>
    %25 = math.tanh %21 : vector<2x8xf32>
    %c2_i32 = arith.constant 2 : i32
    %26 = vector.broadcast %c2_i32 : i32 to vector<2x8xi32>
    %27 = arith.cmpi eq, %22, %26 : vector<2x8xi32>
    %c4_i32 = arith.constant 4 : i32
    %28 = vector.broadcast %c4_i32 : i32 to vector<2x8xi32>
    %29 = arith.cmpi eq, %22, %28 : vector<2x8xi32>
    %30 = arith.ori %27, %29 : vector<2x8xi1>
    %31 = arith.negf %21 : vector<2x8xf32>
    %32 = math.exp %31 : vector<2x8xf32>
    %cst_17 = arith.constant 1.000000e+00 : f32
    %33 = vector.broadcast %cst_17 : f32 to vector<2x8xf32>
    %34 = arith.addf %33, %32 : vector<2x8xf32>
    %35 = arith.divf %33, %34 : vector<2x8xf32>
    %c6_i32 = arith.constant 6 : i32
    %36 = vector.broadcast %c6_i32 : i32 to vector<2x8xi32>
    %37 = arith.cmpi sge, %22, %36 : vector<2x8xi32>
    %cst_18 = arith.constant 0.000000e+00 : f32
    %38 = vector.broadcast %cst_18 : f32 to vector<2x8xf32>
    %39 = arith.maximumf %21, %38 : vector<2x8xf32>
    %40 = vector.broadcast %cst_18 : f32 to vector<2x8xf32>
    %41 = arith.subf %21, %40 : vector<2x8xf32>
    %42 = arith.cmpf one, %41, %41 : vector<2x8xf32>
    %43 = vector.broadcast %cst_18 : f32 to vector<2x8xf32>
    %44 = arith.addf %21, %43 : vector<2x8xf32>
    %45 = math.absf %41 : vector<2x8xf32>
    %cst_19 = arith.constant 0.000000e+00 : f32
    %46 = vector.broadcast %cst_19 : f32 to vector<2x8xf32>
    %47 = arith.subf %46, %45 : vector<2x8xf32>
    %48 = math.exp %47 : vector<2x8xf32>
    %49 = math.log1p %48 : vector<2x8xf32>
    %50 = arith.addf %39, %49 : vector<2x8xf32>
    %51 = arith.select %42, %44, %50 : vector<2x8xi1>, vector<2x8xf32>
    %cst_20 = arith.constant 1.000000e-03 : f32
    %52 = vector.broadcast %cst_20 : f32 to vector<2x8xf32>
    %53 = arith.addf %51, %52 : vector<2x8xf32>
    %54 = arith.select %37, %21, %53 : vector<2x8xi1>, vector<2x8xf32>
    %55 = arith.select %30, %35, %54 : vector<2x8xi1>, vector<2x8xf32>
    %56 = arith.select %24, %25, %55 : vector<2x8xi1>, vector<2x8xf32>
    %c0_21 = arith.constant 0 : index
    %c0_22 = arith.constant 0 : index
    %57 = vector.load %arg7[%c0_21, %c0_22] : memref<2x8xf32, #tpu.memory_space<vmem>>, vector<2x8xf32>
    tpu.vector_store %arg7[%c0_21, %c0_22], %56 {strides = array<i32>} : memref<2x8xf32, #tpu.memory_space<vmem>>, vector<2x8xf32>,
    return
  }
}

</mosaic_0001>

<bundles_post_ra>
// kernel: actor_critic_forward.4
= control target key start
LH: loop header
LB: loop body
LE: loop exit
PB: predicated region body
PF: predicated region fallthrough
CT: control target
= control target key end

     0   :  { %vm423_vm0 = vcmask 257024   ;;  %s830_s1 = inlined_call_operand.vmem [shape: bf16[256,32], index: 1, kind: input, shape index: {}]   ;;  %s831_s0 = inlined_call_operand.vmem [shape: bf16[128,256], index: 0, kind: input, shape index: {}]   ;;  %s832_s2 = inlined_call_operand.vmem [shape: f32[1,32], index: 2, kind: input, shape index: {}]   ;;  %s833_s3 = inlined_call_operand.vmem [shape: bf16[128,32], index: 3, kind: output, shape index: {}]  }
   0x1   :  { %v589_v0 = vld [vmem:[%s830_s1 + $0x40] sm:$0xff]   ;;  %v591_v2 = vld [vmem:[%s830_s1 + $0x48] sm:$0xff]   ;;  %v593_v4 = vld [vmem:[%s830_s1 + $0x50] sm:$0xff]  }
   0x2   :  { %v590_v1 = vld [vmem:[%s830_s1] sm:$0xff]   ;;  %509 = vmatprep.subr.bf16.mxu0 %v589_v0  ;;  %573 = vmatprep.subr.bf16.mxu1 %v589_v0  ;;  %v592_v3 = vld [vmem:[%s830_s1 + $0x8] sm:$0xff]   ;;  %v594_v5 = vld [vmem:[%s830_s1 + $0x10] sm:$0xff]  }
   0x3   :  { %510 = vmatpush3.bf16.msra.mxu0 %v590_v1  ;;  %581 = vmatpush3.bf16.msra.mxu1 %v590_v1  ;;  %v595_v6 = vld [vmem:[%s830_s1 + $0x58] sm:$0xff]   ;;  %v597_v8 = vld [vmem:[%s830_s1 + $0x60] sm:$0xff]   ;;  %v599_v10 = vld [vmem:[%s830_s1 + $0x68] sm:$0xff]  }
   0x4   :  { %511 = vmatprep.subr.bf16.mxu0 %v591_v2  ;;  %574 = vmatprep.subr.bf16.mxu1 %v591_v2  ;;  %v596_v7 = vld [vmem:[%s830_s1 + $0x18] sm:$0xff]   ;;  %v598_v9 = vld [vmem:[%s830_s1 + $0x20] sm:$0xff]   ;;  %v600_v13 = vld [vmem:[%s830_s1 + $0x28] sm:$0xff]  }
   0x5   :  { %v607_v11 = vld [vmem:[%s831_s0 + $0x4] ss:$8 sps:$4 sm:$0xff]   ;;  %v601_v14 = vld [vmem:[%s830_s1 + $0x70] sm:$0xff]   ;;  %v603_v16 = vld [vmem:[%s830_s1 + $0x78] sm:$0xff]  }
   0x6   :  { %v610_v12 = vld [vmem:[%s831_s0 + $0x44] ss:$8 sps:$4 sm:$0xff]   ;;  %278 = vmatprep.mubr.bf16.mxu0 %v607_v11  ;;  %v602_v15 = vld [vmem:[%s830_s1 + $0x30] sm:$0xff]   ;;  %v604_v17 = vld [vmem:[%s830_s1 + $0x38] sm:$0xff]  }
   0x7   :  { %512 = vmatpush3.bf16.msra.mxu0 %v592_v3  ;;  %582 = vmatpush3.bf16.msra.mxu1 %v592_v3  ;;  %v605_v18 = vld [vmem:[%s831_s0] ss:$8 sps:$4 sm:$0xff]   ;;  %v611_v20 = vld [vmem:[%s831_s0 + $0x14] ss:$8 sps:$4 sm:$0xff]   ;;  %v615_v22 = vld [vmem:[%s831_s0 + $0x10] ss:$8 sps:$4 sm:$0xff]  }
   0x8   :  { %513 = vmatprep.subr.bf16.mxu0 %v593_v4  ;;  %575 = vmatprep.subr.bf16.mxu1 %v593_v4  ;;  %v608_v19 = vld [vmem:[%s831_s0 + $0x40] ss:$8 sps:$4 sm:$0xff]   ;;  %v613_v21 = vld [vmem:[%s831_s0 + $0x54] ss:$8 sps:$4 sm:$0xff]   ;;  %v616_v23 = vld [vmem:[%s831_s0 + $0x50] ss:$8 sps:$4 sm:$0xff]  }
   0x9   :  { %310 = vmatprep.mubr.bf16.mxu1 %v610_v12  ;;  %v617_v24 = vld [vmem:[%s831_s0 + $0x24] ss:$8 sps:$4 sm:$0xff]   ;;  %v621_v26 = vld [vmem:[%s831_s0 + $0x20] ss:$8 sps:$4 sm:$0xff]   ;;  %v623_v28 = vld [vmem:[%s831_s0 + $0x34] ss:$8 sps:$4 sm:$0xff]  }
   0xa   :  { %v619_v25 = vld [vmem:[%s831_s0 + $0x64] ss:$8 sps:$4 sm:$0xff]   ;;  %v622_v27 = vld [vmem:[%s831_s0 + $0x60] ss:$8 sps:$4 sm:$0xff]   ;;  %v625_v29 = vld [vmem:[%s831_s0 + $0x74] ss:$8 sps:$4 sm:$0xff]  }
   0xb   :  { %514 = vmatpush3.bf16.msra.mxu0 %v594_v5  ;;  %583 = vmatpush3.bf16.msra.mxu1 %v594_v5  ;;  %v627_v30 = vld [vmem:[%s831_s0 + $0x30] ss:$8 sps:$4 sm:$0xff]   ;;  %v748_v34 = vld [vmem:[%s832_s2] ss:$0 sm:$0xff] }
   0xc   :  { %515 = vmatprep.subr.bf16.mxu0 %v595_v6  ;;  %576 = vmatprep.subr.bf16.mxu1 %v595_v6  ;;  %v628_v31 = vld [vmem:[%s831_s0 + $0x70] ss:$8 sps:$4 sm:$0xff]  }
   0xf   :  { %516 = vmatpush3.bf16.msra.mxu0 %v596_v7  ;;  %584 = vmatpush3.bf16.msra.mxu1 %v596_v7 }
  0x10   :  { %517 = vmatprep.subr.bf16.mxu0 %v597_v8  ;;  %577 = vmatprep.subr.bf16.mxu1 %v597_v8 }
  0x13   :  { %518 = vmatpush3.bf16.msra.mxu0 %v598_v9  ;;  %585 = vmatpush3.bf16.msra.mxu1 %v598_v9 }
  0x14   :  { %519 = vmatprep.subr.bf16.mxu0 %v599_v10  ;;  %578 = vmatprep.subr.bf16.mxu1 %v599_v10 }
  0x17   :  { %520 = vmatpush3.bf16.msra.mxu0 %v600_v13  ;;  %586 = vmatpush3.bf16.msra.mxu1 %v600_v13 }
  0x18   :  { %521 = vmatprep.subr.bf16.mxu0 %v601_v14  ;;  %579 = vmatprep.subr.bf16.mxu1 %v601_v14 }
  0x1b   :  { %522 = vmatpush3.bf16.msra.mxu0 %v602_v15  ;;  %587 = vmatpush3.bf16.msra.mxu1 %v602_v15 }
  0x1c   :  { %523 = vmatprep.subr.bf16.mxu0 %v603_v16  ;;  %580 = vmatprep.subr.bf16.mxu1 %v603_v16 }
  0x1f   :  { %524 = vmatpush3.bf16.msra.mxu0 %v604_v17  ;;  %588 = vmatpush3.bf16.msra.mxu1 %v604_v17 }
  0x22   :  { %279 = vmatmul.mubr.bf16.vlgmr.msra.gmra.mrb[0].mxu0 %v605_v18  ;;  %311 = vmatmul.mubr.bf16.vlgmr.msra.gmra.mrb[0].mxu1 %v608_v19 }
  0x23   :  { %286 = vmatprep.mubr.bf16.mxu0 %v611_v20  ;;  %318 = vmatprep.mubr.bf16.mxu1 %v613_v21 }
  0x2a   :  { %287 = vmatmul.mubr.bf16.gmra.mrb[4].mxu0 %v615_v22  ;;  %319 = vmatmul.mubr.bf16.gmra.mrb[4].mxu1 %v616_v23 }
  0x2b   :  { %294 = vmatprep.mubr.bf16.mxu0 %v617_v24  ;;  %326 = vmatprep.mubr.bf16.mxu1 %v619_v25 }
  0x32   :  { %295 = vmatmul.mubr.bf16.gmra.mrb[8].mxu0 %v621_v26  ;;  %327 = vmatmul.mubr.bf16.gmra.mrb[8].mxu1 %v622_v27 }
  0x33   :  { %302 = vmatprep.mubr.bf16.mxu0 %v623_v28  ;;  %334 = vmatprep.mubr.bf16.mxu1 %v625_v29 }
  0x3a   :  { %303 = vmatmul.mubr.bf16.gmra.mrb[12].mxu0 %v627_v30  ;;  %335 = vmatmul.mubr.bf16.gmra.mrb[12].mxu1 %v628_v31 }
  0xf5   :  { %v525_v32 = vpop.f32.mrb[0].mxu0  ;;  %v549_v33 = vpop.f32.mrb[0].mxu1 }
  0xf6   :  { %v526_v35 = vpop.f32.mrb[1].mxu0  ;;  %v550_v36 = vpop.f32.mrb[1].mxu1 }
  0xf7   :  { %v527_v37 = vadd.f32 %v526_v35, %v525_v32  ;;  %v551_v38 = vadd.f32 %v550_v36, %v549_v33  ;;  %v528_v39 = vpop.f32.mrb[2].mxu0  ;;  %v552_v40 = vpop.f32.mrb[2].mxu1 }
  0xf8   :  { %v529_v41 = vpop.f32.mrb[3].mxu0  ;;  %v553_v42 = vpop.f32.mrb[3].mxu1 }
  0xf9   :  { %v281_v43 = vadd.f32 %v527_v37, %v748_v34  ;;  %v313_v44 = vadd.f32 %v551_v38, %v748_v34  ;;  %v530_v45 = vadd.f32 %v529_v41, %v528_v39  ;;  %v554_v46 = vadd.f32 %v553_v42, %v552_v40 }
  0xfb   :  { %v343_v47 = vmax.f32 %v281_v43, 0.0  ;;  %v351_v48 = vmax.f32 %v313_v44, 0.0  ;;  %v284_v49 = vadd.f32 %v530_v45, %v748_v34  ;;  %v316_v50 = vadd.f32 %v554_v46, %v748_v34 }
  0xfd   :  { %v493_v51 = vpack.c.bf16 %v343_v47, %v343_v47  ;;  %v501_v52 = vpack.c.bf16 %v351_v48, %v351_v48  ;;  %v344_v53 = vmax.f32 %v284_v49, 0.0  ;;  %v352_v54 = vmax.f32 %v316_v50, 0.0  ;;  %v531_v55 = vpop.f32.mrb[4].mxu0  ;;  %v555_v56 = vpop.f32.mrb[4].mxu1 }
  0xfe   :  { %v532_v57 = vpop.f32.mrb[5].mxu0  ;;  %v556_v58 = vpop.f32.mrb[5].mxu1 }
  0xff   :  { %424 = vst.msk [vmem:[%s833_s3] sm:$0xf] %vm423_vm0, %v493_v51  ;;  %432 = vst.msk [vmem:[%s833_s3 + $0x20] sm:$0xf] %vm423_vm0, %v501_v52  ;;  %v494_v59 = vpack.c.bf16 %v344_v53, %v344_v53  ;;  %v502_v60 = vpack.c.bf16 %v352_v54, %v352_v54  ;;  %v533_v61 = vadd.f32 %v532_v57, %v531_v55  ;;  %v534_v63 = vpop.f32.mrb[6].mxu0  ;;  %v558_v0 = vpop.f32.mrb[6].mxu1 }
 0x100   :  { %v557_v62 = vadd.f32 %v556_v58, %v555_v56  ;;  %v535_v1 = vpop.f32.mrb[7].mxu0  ;;  %v559_v2 = vpop.f32.mrb[7].mxu1 }
 0x101   :  { %425 = vst.msk [vmem:[%s833_s3 + $0x4] sm:$0xf] %vm423_vm0, %v494_v59  ;;  %433 = vst.msk [vmem:[%s833_s3 + $0x24] sm:$0xf] %vm423_vm0, %v502_v60  ;;  %v289_v3 = vadd.f32 %v533_v61, %v748_v34  ;;  %v536_v5 = vadd.f32 %v535_v1, %v534_v63  ;;  %v560_v6 = vadd.f32 %v559_v2, %v558_v0 }
 0x102   :  { %v321_v4 = vadd.f32 %v557_v62, %v748_v34 }
 0x103   :  { %v345_v7 = vmax.f32 %v289_v3, 0.0  ;;  %v292_v9 = vadd.f32 %v536_v5, %v748_v34  ;;  %v324_v10 = vadd.f32 %v560_v6, %v748_v34 }
 0x104   :  { %v353_v8 = vmax.f32 %v321_v4, 0.0 }
 0x105   :  { %v495_v11 = vpack.c.bf16 %v345_v7, %v345_v7  ;;  %v346_v13 = vmax.f32 %v292_v9, 0.0  ;;  %v354_v14 = vmax.f32 %v324_v10, 0.0  ;;  %v537_v15 = vpop.f32.mrb[8].mxu0  ;;  %v561_v16 = vpop.f32.mrb[8].mxu1 }
 0x106   :  { %v503_v12 = vpack.c.bf16 %v353_v8, %v353_v8  ;;  %v538_v17 = vpop.f32.mrb[9].mxu0  ;;  %v562_v18 = vpop.f32.mrb[9].mxu1 }
 0x107   :  { %426 = vst.msk [vmem:[%s833_s3 + $0x8] sm:$0xf] %vm423_vm0, %v495_v11  ;;  %v496_v19 = vpack.c.bf16 %v346_v13, %v346_v13  ;;  %v504_v20 = vpack.c.bf16 %v354_v14, %v354_v14  ;;  %v539_v21 = vadd.f32 %v538_v17, %v537_v15  ;;  %v563_v22 = vadd.f32 %v562_v18, %v561_v16  ;;  %v540_v23 = vpop.f32.mrb[10].mxu0  ;;  %v564_v24 = vpop.f32.mrb[10].mxu1 }
 0x108   :  { %434 = vst.msk [vmem:[%s833_s3 + $0x28] sm:$0xf] %vm423_vm0, %v503_v12  ;;  %v541_v25 = vpop.f32.mrb[11].mxu0  ;;  %v565_v26 = vpop.f32.mrb[11].mxu1 }
 0x109   :  { %427 = vst.msk [vmem:[%s833_s3 + $0xc] sm:$0xf] %vm423_vm0, %v496_v19  ;;  %435 = vst.msk [vmem:[%s833_s3 + $0x2c] sm:$0xf] %vm423_vm0, %v504_v20  ;;  %v297_v27 = vadd.f32 %v539_v21, %v748_v34  ;;  %v329_v28 = vadd.f32 %v563_v22, %v748_v34  ;;  %v542_v29 = vadd.f32 %v541_v25, %v540_v23 }
 0x10a   :  { %v566_v30 = vadd.f32 %v565_v26, %v564_v24 }
 0x10b   :  { %v347_v31 = vmax.f32 %v297_v27, 0.0  ;;  %v355_v32 = vmax.f32 %v329_v28, 0.0  ;;  %v300_v33 = vadd.f32 %v542_v29, %v748_v34 }
 0x10c   :  { %v332_v35 = vadd.f32 %v566_v30, %v748_v34 }
 0x10d   :  { %v497_v36 = vpack.c.bf16 %v347_v31, %v347_v31  ;;  %v505_v37 = vpack.c.bf16 %v355_v32, %v355_v32  ;;  %v348_v38 = vmax.f32 %v300_v33, 0.0  ;;  %v543_v40 = vpop.f32.mrb[12].mxu0  ;;  %v567_v41 = vpop.f32.mrb[12].mxu1 }
 0x10e   :  { %v356_v39 = vmax.f32 %v332_v35, 0.0  ;;  %v544_v42 = vpop.f32.mrb[13].mxu0  ;;  %v568_v43 = vpop.f32.mrb[13].mxu1 }
 0x10f   :  { %428 = vst.msk [vmem:[%s833_s3 + $0x10] sm:$0xf] %vm423_vm0, %v497_v36  ;;  %436 = vst.msk [vmem:[%s833_s3 + $0x30] sm:$0xf] %vm423_vm0, %v505_v37  ;;  %v498_v44 = vpack.c.bf16 %v348_v38, %v348_v38  ;;  %v545_v46 = vadd.f32 %v544_v42, %v543_v40  ;;  %v569_v47 = vadd.f32 %v568_v43, %v567_v41  ;;  %v546_v48 = vpop.f32.mrb[14].mxu0  ;;  %v570_v49 = vpop.f32.mrb[14].mxu1 }
 0x110   :  { %v506_v45 = vpack.c.bf16 %v356_v39, %v356_v39  ;;  %v547_v50 = vpop.f32.mrb[15].mxu0  ;;  %v571_v51 = vpop.f32.mrb[15].mxu1 }
 0x111   :  { %429 = vst.msk [vmem:[%s833_s3 + $0x14] sm:$0xf] %vm423_vm0, %v498_v44  ;;  %v305_v52 = vadd.f32 %v545_v46, %v748_v34  ;;  %v337_v53 = vadd.f32 %v569_v47, %v748_v34  ;;  %v548_v54 = vadd.f32 %v547_v50, %v546_v48  ;;  %v572_v55 = vadd.f32 %v571_v51, %v570_v49 }
 0x112   :  { %437 = vst.msk [vmem:[%s833_s3 + $0x34] sm:$0xf] %vm423_vm0, %v506_v45 }
 0x113   :  { %v349_v56 = vmax.f32 %v305_v52, 0.0  ;;  %v357_v57 = vmax.f32 %v337_v53, 0.0  ;;  %v308_v58 = vadd.f32 %v548_v54, %v748_v34  ;;  %v340_v59 = vadd.f32 %v572_v55, %v748_v34 }
 0x115   :  { %v499_v60 = vpack.c.bf16 %v349_v56, %v349_v56  ;;  %v507_v61 = vpack.c.bf16 %v357_v57, %v357_v57  ;;  %v350_v62 = vmax.f32 %v308_v58, 0.0  ;;  %v358_v63 = vmax.f32 %v340_v59, 0.0 }
 0x117   :  { %430 = vst.msk [vmem:[%s833_s3 + $0x18] sm:$0xf] %vm423_vm0, %v499_v60  ;;  %438 = vst.msk [vmem:[%s833_s3 + $0x38] sm:$0xf] %vm423_vm0, %v507_v61  ;;  %v500_v0 = vpack.c.bf16 %v350_v62, %v350_v62  ;;  %v508_v1 = vpack.c.bf16 %v358_v63, %v358_v63 }
 0x119   :  { %431 = vst.msk [vmem:[%s833_s3 + $0x1c] sm:$0xf] %vm423_vm0, %v500_v0  ;;  %439 = vst.msk [vmem:[%s833_s3 + $0x3c] sm:$0xf] %vm423_vm0, %v508_v1 }

// kernel: actor_critic_forward.5
= control target key start
LH: loop header
LB: loop body
LE: loop exit
PB: predicated region body
PF: predicated region fallthrough
CT: control target
= control target key end

     0   :  { %vm430_vm0 = vcmask 519168   ;;  %s732_s1 = inlined_call_operand.vmem [shape: bf16[512,64], index: 1, kind: input, shape index: {}]   ;;  %s733_s0 = inlined_call_operand.vmem [shape: bf16[24,512], index: 0, kind: input, shape index: {}]   ;;  %s734_s2 = inlined_call_operand.vmem [shape: f32[1,64], index: 2, kind: input, shape index: {}]   ;;  %s735_s3 = inlined_call_operand.vmem [shape: bf16[24,64], index: 3, kind: output, shape index: {}]  }
   0x1   :  { %v541_v0 = vld [vmem:[%s732_s1 + $0x40] sm:$0xff]   ;;  %v545_v4 = vld [vmem:[%s732_s1 + $0x48] sm:$0xff]   ;;  %v549_v8 = vld [vmem:[%s732_s1 + $0x50] sm:$0xff]  }
   0x2   :  { %v542_v1 = vld [vmem:[%s732_s1 + $0xc0] sm:$0xff]   ;;  %485 = vmatprep.subr.bf16.mxu0 %v541_v0  ;;  %v546_v5 = vld [vmem:[%s732_s1 + $0xc8] sm:$0xff]   ;;  %v550_v9 = vld [vmem:[%s732_s1 + $0xd0] sm:$0xff]  }
   0x3   :  { %v543_v2 = vld [vmem:[%s732_s1] sm:$0xff]   ;;  %513 = vmatprep.subr.bf16.mxu1 %v542_v1  ;;  %v547_v6 = vld [vmem:[%s732_s1 + $0x8] sm:$0xff]   ;;  %v551_v10 = vld [vmem:[%s732_s1 + $0x10] sm:$0xff]  }
   0x4   :  { %v544_v3 = vld [vmem:[%s732_s1 + $0x80] sm:$0xff]   ;;  %486 = vmatpush3.bf16.msra.mxu0 %v543_v2  ;;  %v548_v7 = vld [vmem:[%s732_s1 + $0x88] sm:$0xff]   ;;  %v552_v11 = vld [vmem:[%s732_s1 + $0x90] sm:$0xff]  }
   0x5   :  { %514 = vmatpush3.bf16.msra.mxu1 %v544_v3  ;;  %487 = vmatprep.subr.bf16.mxu0 %v545_v4  ;;  %v553_v12 = vld [vmem:[%s732_s1 + $0x58] sm:$0xff]   ;;  %v557_v16 = vld [vmem:[%s732_s1 + $0x60] sm:$0xff]   ;;  %v561_v20 = vld [vmem:[%s732_s1 + $0x68] sm:$0xff]  }
   0x6   :  { %515 = vmatprep.subr.bf16.mxu1 %v546_v5  ;;  %v554_v13 = vld [vmem:[%s732_s1 + $0xd8] sm:$0xff]   ;;  %v558_v17 = vld [vmem:[%s732_s1 + $0xe0] sm:$0xff]   ;;  %v562_v21 = vld [vmem:[%s732_s1 + $0xe8] sm:$0xff]  }
   0x7   :  { %v555_v14 = vld [vmem:[%s732_s1 + $0x18] sm:$0xff]   ;;  %v559_v18 = vld [vmem:[%s732_s1 + $0x20] sm:$0xff]   ;;  %v563_v22 = vld [vmem:[%s732_s1 + $0x28] sm:$0xff]  }
   0x8   :  { %488 = vmatpush3.bf16.msra.mxu0 %v547_v6  ;;  %v556_v15 = vld [vmem:[%s732_s1 + $0x98] sm:$0xff]   ;;  %v560_v19 = vld [vmem:[%s732_s1 + $0xa0] sm:$0xff]   ;;  %v564_v23 = vld [vmem:[%s732_s1 + $0xa8] sm:$0xff]  }
   0x9   :  { %516 = vmatpush3.bf16.msra.mxu1 %v548_v7  ;;  %489 = vmatprep.subr.bf16.mxu0 %v549_v8  ;;  %v565_v24 = vld [vmem:[%s732_s1 + $0x70] sm:$0xff]   ;;  %v569_v28 = vld [vmem:[%s732_s1 + $0x78] sm:$0xff]   ;;  %v19_v36 = vld [vmem:[%s733_s0 + $0x20] sm:$0xff] }
   0xa   :  { %517 = vmatprep.subr.bf16.mxu1 %v550_v9  ;;  %v566_v25 = vld [vmem:[%s732_s1 + $0xf0] sm:$0xff]   ;;  %v570_v29 = vld [vmem:[%s732_s1 + $0xf8] sm:$0xff]   ;;  %v444_v37 = vcombine.high %v19_v36, %v19_v36  ;;  %v20_v38 = vld [vmem:[%s733_s0 + $0x28] sm:$0xff]  ;;  %v443_v40 = vcombine.low %v19_v36, %v19_v36 }
   0xb   :  { %v567_v26 = vld [vmem:[%s732_s1 + $0x30] sm:$0xff]   ;;  %v571_v30 = vld [vmem:[%s732_s1 + $0x38] sm:$0xff]   ;;  %v446_v39 = vcombine.high %v20_v38, %v20_v38  ;;  %v445_v41 = vcombine.low %v20_v38, %v20_v38  ;;  %v438_v44 = vld [vmem:[%s734_s2] ss:$0 sm:$0xff] }
   0xc   :  { %490 = vmatpush3.bf16.msra.mxu0 %v551_v10  ;;  %v568_v27 = vld [vmem:[%s732_s1 + $0xb0] sm:$0xff]   ;;  %v572_v31 = vld [vmem:[%s732_s1 + $0xb8] sm:$0xff]  }
   0xd   :  { %518 = vmatpush3.bf16.msra.mxu1 %v552_v11  ;;  %491 = vmatprep.subr.bf16.mxu0 %v553_v12  ;;  %v573_v32 = vld [vmem:[%s733_s0] ss:$16 sps:$4 sm:$0xff]   ;;  %v575_v33 = vld [vmem:[%s733_s0 + $0x4] ss:$16 sps:$4 sm:$0xff]   ;;  %v576_v34 = vld [vmem:[%s733_s0 + $0x8] ss:$16 sps:$4 sm:$0xff]  }
   0xe   :  { %519 = vmatprep.subr.bf16.mxu1 %v554_v13  ;;  %v578_v35 = vld [vmem:[%s733_s0 + $0xc] ss:$16 sps:$4 sm:$0xff]   ;;  %350 = vmatprep.mubr.bf16.mxu0 %v575_v33 }
   0xf   :  { %398 = vmatprep.mubr.bf16.mxu1 %v578_v35 }
  0x10   :  { %492 = vmatpush3.bf16.msra.mxu0 %v555_v14 }
  0x11   :  { %520 = vmatpush3.bf16.msra.mxu1 %v556_v15  ;;  %493 = vmatprep.subr.bf16.mxu0 %v557_v16 }
  0x12   :  { %521 = vmatprep.subr.bf16.mxu1 %v558_v17 }
  0x14   :  { %494 = vmatpush3.bf16.msra.mxu0 %v559_v18 }
  0x15   :  { %522 = vmatpush3.bf16.msra.mxu1 %v560_v19  ;;  %495 = vmatprep.subr.bf16.mxu0 %v561_v20 }
  0x16   :  { %523 = vmatprep.subr.bf16.mxu1 %v562_v21 }
  0x18   :  { %496 = vmatpush3.bf16.msra.mxu0 %v563_v22 }
  0x19   :  { %524 = vmatpush3.bf16.msra.mxu1 %v564_v23  ;;  %497 = vmatprep.subr.bf16.mxu0 %v565_v24 }
  0x1a   :  { %525 = vmatprep.subr.bf16.mxu1 %v566_v25 }
  0x1c   :  { %498 = vmatpush3.bf16.msra.mxu0 %v567_v26 }
  0x1d   :  { %526 = vmatpush3.bf16.msra.mxu1 %v568_v27  ;;  %499 = vmatprep.subr.bf16.mxu0 %v569_v28 }
  0x1e   :  { %527 = vmatprep.subr.bf16.mxu1 %v570_v29 }
  0x20   :  { %500 = vmatpush3.bf16.msra.mxu0 %v571_v30 }
  0x21   :  { %528 = vmatpush3.bf16.msra.mxu1 %v572_v31 }
  0x23   :  { %351 = vmatmul.mubr.bf16.vlgmr.msra.gmra.mrb[0].mxu0 %v573_v32 }
  0x24   :  { %399 = vmatmul.mubr.bf16.vlgmr.msra.gmra.mrb[0].mxu1 %v576_v34  ;;  %358 = vmatprep.mubr.bf16.mxu0 %v444_v37 }
  0x25   :  { %406 = vmatprep.mubr.bf16.mxu1 %v446_v39 }
  0x2b   :  { %359 = vmatmul.mubr.bf16.gmra.mrb[4].mxu0 %v443_v40 }
  0x2c   :  { %407 = vmatmul.mubr.bf16.gmra.mrb[4].mxu1 %v445_v41 }
  0xf6   :  { %v501_v42 = vpop.f32.mrb[0].mxu0 }
  0xf7   :  { %v529_v43 = vpop.f32.mrb[0].mxu1  ;;  %v502_v45 = vpop.f32.mrb[1].mxu0 }
  0xf8   :  { %v503_v46 = vadd.f32 %v502_v45, %v501_v42  ;;  %v530_v47 = vpop.f32.mrb[1].mxu1  ;;  %v504_v48 = vpop.f32.mrb[2].mxu0 }
  0xf9   :  { %v531_v49 = vadd.f32 %v530_v47, %v529_v43  ;;  %v532_v50 = vpop.f32.mrb[2].mxu1  ;;  %v505_v51 = vpop.f32.mrb[3].mxu0 }
  0xfa   :  { %v353_v52 = vadd.f32 %v503_v46, %v438_v44  ;;  %v506_v53 = vadd.f32 %v505_v51, %v504_v48  ;;  %v533_v54 = vpop.f32.mrb[3].mxu1 }
  0xfb   :  { %v534_v55 = vadd.f32 %v533_v54, %v532_v50 }
  0xfc   :  { %v401_v56 = vadd.f32 %v531_v49, %v353_v52  ;;  %v356_v57 = vadd.f32 %v506_v53, %v438_v44 }
  0xfe   :  { %v414_v58 = vmax.f32 %v401_v56, 0.0  ;;  %v404_v59 = vadd.f32 %v534_v55, %v356_v57  ;;  %v507_v60 = vpop.f32.mrb[4].mxu0 }
  0xff   :  { %v535_v61 = vpop.f32.mrb[4].mxu1  ;;  %v508_v62 = vpop.f32.mrb[5].mxu0 }
 0x100   :  { %v482_v63 = vpack.c.bf16 %v414_v58, %v414_v58  ;;  %v415_v0 = vmax.f32 %v404_v59, 0.0  ;;  %v509_v1 = vadd.f32 %v508_v62, %v507_v60  ;;  %v536_v2 = vpop.f32.mrb[5].mxu1  ;;  %v510_v3 = vpop.f32.mrb[6].mxu0 }
 0x101   :  { %v537_v4 = vadd.f32 %v536_v2, %v535_v61  ;;  %v538_v5 = vpop.f32.mrb[6].mxu1  ;;  %v511_v6 = vpop.f32.mrb[7].mxu0 }
 0x102   :  { %431 = vst.msk [vmem:[%s735_s3] sm:$0xf] %vm430_vm0, %v482_v63  ;;  %v483_v7 = vpack.c.bf16 %v415_v0, %v415_v0  ;;  %v361_v8 = vadd.f32 %v509_v1, %v438_v44  ;;  %v539_v9 = vpop.f32.mrb[7].mxu1 }
 0x104   :  { %432 = vst.msk [vmem:[%s735_s3 + $0x4] sm:$0xf] %vm430_vm0, %v483_v7  ;;  %v409_v10 = vadd.f32 %v537_v4, %v361_v8 }
 0x106   :  { %v416_v11 = vmax.f32 %v409_v10, 0.0 }
 0x108   :  { %v484_v12 = vpack.c.bf16 %v416_v11, %v416_v11 }
 0x10a   :  { %433 = vst.msk [vmem:[%s735_s3 + $0x8] sm:$0xf] %vm430_vm0, %v484_v12 }

// kernel: actor_critic_forward.6
= control target key start
LH: loop header
LB: loop body
LE: loop exit
PB: predicated region body
PF: predicated region fallthrough
CT: control target
= control target key end

     0   :  { %v609_v35 = vmov 0.0   ;;  %vm610_vm0 = vmmov 0   ;;  %vm330_vm1 = vcmask 523264   ;;  %vm456_vm2 = vcmask 519168   ;;  %s754_s1 = inlined_call_operand.vmem [shape: bf16[576,64], index: 1, kind: input, shape index: {}]   ;;  %s755_s0 = inlined_call_operand.vmem [shape: bf16[8,576], index: 0, kind: input, shape index: {}]   ;;  %s756_s2 = inlined_call_operand.vmem [shape: f32[1,64], index: 2, kind: input, shape index: {}]   ;;  %s757_s3 = inlined_call_operand.vmem [shape: bf16[8,64], index: 3, kind: output, shape index: {}]  }
   0x1   :  { %v568_v0 = vld [vmem:[%s754_s1 + $0x40] sm:$0xff]   ;;  %v572_v4 = vld [vmem:[%s754_s1 + $0x48] sm:$0xff]   ;;  %v576_v8 = vld [vmem:[%s754_s1 + $0x50] sm:$0xff]  }
   0x2   :  { %v569_v1 = vld [vmem:[%s754_s1] sm:$0xff]   ;;  %505 = vmatprep.subr.bf16.mxu0 %v568_v0  ;;  %v573_v5 = vld [vmem:[%s754_s1 + $0x8] sm:$0xff]   ;;  %v577_v9 = vld [vmem:[%s754_s1 + $0x10] sm:$0xff]  }
   0x3   :  { %v570_v2 = vld [vmem:[%s754_s1 + $0xc0] sm:$0xff]   ;;  %506 = vmatpush3.bf16.msra.mxu0 %v569_v1  ;;  %v574_v6 = vld [vmem:[%s754_s1 + $0xc8] sm:$0xff]   ;;  %v578_v10 = vld [vmem:[%s754_s1 + $0xd0] sm:$0xff]  }
   0x4   :  { %v571_v3 = vld [vmem:[%s754_s1 + $0x80] sm:$0xff]   ;;  %527 = vmatprep.subr.bf16.mxu1 %v570_v2  ;;  %507 = vmatprep.subr.bf16.mxu0 %v572_v4  ;;  %v575_v7 = vld [vmem:[%s754_s1 + $0x88] sm:$0xff]   ;;  %v579_v11 = vld [vmem:[%s754_s1 + $0x90] sm:$0xff]  }
   0x5   :  { %528 = vmatpush3.bf16.msra.mxu1 %v571_v3  ;;  %v580_v12 = vld [vmem:[%s754_s1 + $0x58] sm:$0xff]   ;;  %v584_v16 = vld [vmem:[%s754_s1 + $0x60] sm:$0xff]   ;;  %v588_v20 = vld [vmem:[%s754_s1 + $0x68] sm:$0xff]  }
   0x6   :  { %529 = vmatprep.subr.bf16.mxu1 %v574_v6  ;;  %v581_v13 = vld [vmem:[%s754_s1 + $0x18] sm:$0xff]   ;;  %v585_v17 = vld [vmem:[%s754_s1 + $0x20] sm:$0xff]   ;;  %v589_v21 = vld [vmem:[%s754_s1 + $0x28] sm:$0xff]  }
   0x7   :  { %508 = vmatpush3.bf16.msra.mxu0 %v573_v5  ;;  %v582_v14 = vld [vmem:[%s754_s1 + $0xd8] sm:$0xff]   ;;  %v586_v18 = vld [vmem:[%s754_s1 + $0xe0] sm:$0xff]   ;;  %v590_v22 = vld [vmem:[%s754_s1 + $0xe8] sm:$0xff]  }
   0x8   :  { %509 = vmatprep.subr.bf16.mxu0 %v576_v8  ;;  %v583_v15 = vld [vmem:[%s754_s1 + $0x98] sm:$0xff]   ;;  %v587_v19 = vld [vmem:[%s754_s1 + $0xa0] sm:$0xff]   ;;  %v591_v23 = vld [vmem:[%s754_s1 + $0xa8] sm:$0xff]  }
   0x9   :  { %530 = vmatpush3.bf16.msra.mxu1 %v575_v7  ;;  %v592_v24 = vld [vmem:[%s754_s1 + $0x70] sm:$0xff]   ;;  %v596_v28 = vld [vmem:[%s754_s1 + $0x78] sm:$0xff]   ;;  %v15_v31 = vld [vmem:[%s755_s0] sm:$0xff] }
   0xa   :  { %531 = vmatprep.subr.bf16.mxu1 %v578_v10  ;;  %v593_v25 = vld [vmem:[%s754_s1 + $0x30] sm:$0xff]   ;;  %v597_v29 = vld [vmem:[%s754_s1 + $0x38] sm:$0xff]   ;;  %v463_v32 = vcombine.low %v15_v31, %v15_v31  ;;  %v464_v33 = vcombine.high %v15_v31, %v15_v31  ;;  %v16_v36 = vld [vmem:[%s755_s0 + $0x8] sm:$0xff] }
   0xb   :  { %510 = vmatpush3.bf16.msra.mxu0 %v577_v9  ;;  %v594_v26 = vld [vmem:[%s754_s1 + $0xf0] sm:$0xff]   ;;  %v598_v30 = vld [vmem:[%s754_s1 + $0xf8] sm:$0xff]   ;;  %v465_v37 = vcombine.low %v16_v36, %v16_v36  ;;  %v466_v38 = vcombine.high %v16_v36, %v16_v36  ;;  %v605_v39 = vld [vmem:[%s754_s1 + $0x100] sm:$0xff]  }
   0xc   :  { %511 = vmatprep.subr.bf16.mxu0 %v580_v12  ;;  %v595_v27 = vld [vmem:[%s754_s1 + $0xb0] sm:$0xff]   ;;  %v602_v34 = vld [vmem:[%s754_s1 + $0xb8] sm:$0xff]   ;;  %366 = vmatprep.mubr.bf16.mxu0 %v464_v33  ;;  %v606_v40 = vld [vmem:[%s754_s1 + $0x108] sm:$0xff]  }
   0xd   :  { %532 = vmatpush3.bf16.msra.mxu1 %v579_v11  ;;  %406 = vmatprep.mubr.bf16.mxu1 %v466_v38  ;;  %v607_v41 = vld [vmem:[%s754_s1 + $0x110] sm:$0xff]   ;;  %v608_v42 = vld [vmem:[%s754_s1 + $0x118] sm:$0xff]   ;;  %v462_v45 = vld [vmem:[%s756_s2] ss:$0 sm:$0xff] }
   0xe   :  { %533 = vmatprep.subr.bf16.mxu1 %v582_v14  ;;  %v601_v43 = vld [vmem:[%s755_s0 + $0x10] ss:$0 sps:$4 sm:$0xff]  }
   0xf   :  { %512 = vmatpush3.bf16.msra.mxu0 %v581_v13 }
  0x10   :  { %513 = vmatprep.subr.bf16.mxu0 %v584_v16 }
  0x11   :  { %534 = vmatpush3.bf16.msra.mxu1 %v583_v15 }
  0x12   :  { %535 = vmatprep.subr.bf16.mxu1 %v586_v18 }
  0x13   :  { %514 = vmatpush3.bf16.msra.mxu0 %v585_v17 }
  0x14   :  { %515 = vmatprep.subr.bf16.mxu0 %v588_v20 }
  0x15   :  { %536 = vmatpush3.bf16.msra.mxu1 %v587_v19 }
  0x16   :  { %537 = vmatprep.subr.bf16.mxu1 %v590_v22 }
  0x17   :  { %516 = vmatpush3.bf16.msra.mxu0 %v589_v21 }
  0x18   :  { %517 = vmatprep.subr.bf16.mxu0 %v592_v24 }
  0x19   :  { %538 = vmatpush3.bf16.msra.mxu1 %v591_v23 }
  0x1a   :  { %539 = vmatprep.subr.bf16.mxu1 %v594_v26 }
  0x1b   :  { %518 = vmatpush3.bf16.msra.mxu0 %v593_v25 }
  0x1c   :  { %519 = vmatprep.subr.bf16.mxu0 %v596_v28 }
  0x1d   :  { %540 = vmatpush3.bf16.msra.mxu1 %v595_v27 }
  0x1e   :  { %541 = vmatprep.subr.bf16.mxu1 %v598_v30 }
  0x1f   :  { %520 = vmatpush3.bf16.msra.mxu0 %v597_v29 }
  0x20   :  { %554 = vmatprep.subr.bf16.mxu0 %v609_v35 }
  0x21   :  { %542 = vmatpush3.bf16.msra.mxu1 %v602_v34 }
  0x22   :  { %367 = vmatmul.mubr.bf16.vlgmr.msra.gmra.mrb[0].mxu0 %v463_v32 }
  0x23   :  { %555 = vmatpush3.bf16.msra.mxu0 %v605_v39  ;;  %562 = vmatprep.mubr.msk.bf16.mxu0 %vm610_vm0, %v609_v35 }
  0x24   :  { %407 = vmatmul.mubr.bf16.vlgmr.msra.gmra.mrb[0].mxu1 %v465_v37  ;;  %556 = vmatprep.subr.bf16.mxu0 %v609_v35 }
  0x27   :  { %557 = vmatpush3.bf16.msra.mxu0 %v606_v40 }
  0x28   :  { %558 = vmatprep.subr.bf16.mxu0 %v609_v35 }
  0x2b   :  { %559 = vmatpush3.bf16.msra.mxu0 %v607_v41 }
  0x2c   :  { %560 = vmatprep.subr.bf16.mxu0 %v609_v35 }
  0x2f   :  { %561 = vmatpush3.bf16.msra.mxu0 %v608_v42 }
  0x32   :  { %563 = vmatmul.mubr.msk.bf16.vlgmr.msra.gmra.mrb[4].mxu0 %vm330_vm1, %v601_v43 }
  0xf5   :  { %v521_v44 = vpop.f32.mrb[0].mxu0 }
  0xf6   :  { %v522_v46 = vpop.f32.mrb[1].mxu0 }
  0xf7   :  { %v523_v47 = vadd.f32 %v522_v46, %v521_v44  ;;  %v524_v48 = vpop.f32.mrb[2].mxu0  ;;  %v543_v49 = vpop.f32.mrb[0].mxu1 }
  0xf8   :  { %v525_v50 = vpop.f32.mrb[3].mxu0  ;;  %v544_v51 = vpop.f32.mrb[1].mxu1 }
  0xf9   :  { %v369_v52 = vadd.f32 %v523_v47, %v462_v45  ;;  %v545_v53 = vadd.f32 %v544_v51, %v543_v49  ;;  %v546_v54 = vpop.f32.mrb[2].mxu1 }
  0xfa   :  { %v547_v55 = vpop.f32.mrb[3].mxu1 }
  0xfb   :  { %v409_v56 = vadd.f32 %v545_v53, %v369_v52 }
 0x105   :  { %v448_v57 = vpop.f32.mrb[4].mxu0 }
 0x106   :  { %v449_v58 = vadd.f32 %v448_v57, %v409_v56  ;;  %v564_v59 = vpop.f32.mrb[5].mxu0 }
 0x107   :  { %v451_v60 = vpop.f32.mrb[6].mxu0 }
 0x108   :  { %v454_v61 = vmax.f32 %v449_v58, 0.0  ;;  %v565_v62 = vpop.f32.mrb[7].mxu0 }
 0x10a   :  { %v455_v63 = vpack.c.bf16 %v454_v61, %v454_v61 }
 0x10c   :  { %457 = vst.msk [vmem:[%s757_s3] sm:$0xf] %vm456_vm2, %v455_v63 }

// kernel: actor_critic_forward.7
= control target key start
LH: loop header
LB: loop body
LE: loop exit
PB: predicated region body
PF: predicated region fallthrough
CT: control target
= control target key end

     0   :  { %v415_v0 = vmov 0.0   ;;  %vm416_vm0 = vmmov 0   ;;  %vm67_vm1 = vcmask 523264   ;;  %v279_v45 = vlaneseq  ;;  %s514_s1 = inlined_call_operand.vmem [shape: bf16[64,64], index: 1, kind: input, shape index: {}]   ;;  %s515_s3 = inlined_call_operand.vmem [shape: bf16[64,64], index: 3, kind: input, shape index: {}]   ;;  %s516_s0 = inlined_call_operand.vmem [shape: bf16[2,64], index: 0, kind: input, shape index: {}]   ;;  %s517_s5 = inlined_call_operand.vmem [shape: bf16[64,8], index: 5, kind: input, shape index: {}]   ;;  %s518_s2 = inlined_call_operand.vmem [shape: f32[1,64], index: 2, kind: input, shape index: {}]   ;;  %s519_s4 = inlined_call_operand.vmem [shape: f32[1,64], index: 4, kind: input, shape index: {}]   ;;  %s520_s6 = inlined_call_operand.vmem [shape: f32[1,8], index: 6, kind: input, shape index: {}]   ;;  %s521_s7 = inlined_call_operand.vmem [shape: f32[2,8], index: 7, kind: output, shape index: {}]  }
   0x1   :  { %355 = vmatprep.subr.bf16.mxu0 %v415_v0  ;;  %v393_v1 = vld [vmem:[%s514_s1] sm:$0xff]   ;;  %363 = vmatprep.mubr.msk.bf16.mxu0 %vm416_vm0, %v415_v0  ;;  %v394_v2 = vld [vmem:[%s514_s1 + $0x8] sm:$0xff]   ;;  %v395_v4 = vld [vmem:[%s514_s1 + $0x10] sm:$0xff]   ;;  %vm315_vm9 = vcmask 58368  }
   0x2   :  { %367 = vmatprep.subr.bf16.mxu1 %v415_v0  ;;  %375 = vmatprep.mubr.msk.bf16.mxu1 %vm416_vm0, %v415_v0  ;;  %v397_v3 = vld [vmem:[%s515_s3] sm:$0xff]   ;;  %v398_v5 = vld [vmem:[%s515_s3 + $0x8] sm:$0xff]   ;;  %v396_v6 = vld [vmem:[%s514_s1 + $0x18] sm:$0xff]   ;;  %v280_v49 = vand.u32 127, %v279_v45 }
   0x3   :  { %356 = vmatpush3.bf16.msra.mxu0 %v393_v1  ;;  %368 = vmatpush3.bf16.msra.mxu1 %v397_v3  ;;  %v27_v7 = vld [vmem:[%s516_s0] sm:$0x1]  ;;  %v399_v8 = vld [vmem:[%s515_s3 + $0x10] sm:$0xff]   ;;  %v400_v9 = vld [vmem:[%s515_s3 + $0x18] sm:$0xff]  }
   0x4   :  { %357 = vmatprep.subr.bf16.mxu0 %v415_v0  ;;  %369 = vmatprep.subr.bf16.mxu1 %v415_v0  ;;  %v401_v10 = vld [vmem:[%s517_s5] sm:$0xff]   ;;  %v402_v11 = vld [vmem:[%s517_s5 + $0x8] sm:$0xff]   ;;  %v403_v20 = vld [vmem:[%s517_s5 + $0x10] sm:$0xff]   ;;  %vm283_vm3 = vcmp.eq.s32.totalorder %v280_v49, 2  ;;  %vm284_vm4 = vcmp.eq.s32.totalorder %v280_v49, 4  ;;  %vm292_vm6 = vcmp.ge.s32.totalorder %v280_v49, 6 }
   0x5   :  { %v321_v12 = vld [vmem:[%s518_s2] ss:$0 sm:$0xff]  ;;  %v404_v21 = vld [vmem:[%s517_s5 + $0x18] sm:$0xff]   ;;  %vm285_vm7 = vmor %vm283_vm3, %vm284_vm4  ;;  %vm281_vm8 = vcmp.eq.s32.totalorder %v280_v49, 0 }
   0x6   :  { %v327_v22 = vld [vmem:[%s519_s4] ss:$0 sm:$0xff] }
   0x7   :  { %358 = vmatpush3.bf16.msra.mxu0 %v394_v2  ;;  %370 = vmatpush3.bf16.msra.mxu1 %v398_v5  ;;  %v333_v30 = vld [vmem:[%s520_s6] ss:$0 sm:$0xff] }
   0x8   :  { %359 = vmatprep.subr.bf16.mxu0 %v415_v0  ;;  %371 = vmatprep.subr.bf16.mxu1 %v415_v0 }
   0xb   :  { %360 = vmatpush3.bf16.msra.mxu0 %v395_v4  ;;  %372 = vmatpush3.bf16.msra.mxu1 %v399_v8 }
   0xc   :  { %361 = vmatprep.subr.bf16.mxu0 %v415_v0  ;;  %373 = vmatprep.subr.bf16.mxu1 %v415_v0 }
   0xf   :  { %362 = vmatpush3.bf16.msra.mxu0 %v396_v6  ;;  %374 = vmatpush3.bf16.msra.mxu1 %v400_v9 }
  0x10   :  { %379 = vmatprep.subr.bf16.mxu0 %v415_v0 }
  0x12   :  { %364 = vmatmul.mubr.msk.bf16.vlgmr.msra.gmra.mrb[0].mxu0 %vm67_vm1, %v27_v7 }
  0x13   :  { %387 = vmatprep.mubr.msk.bf16.mxu0 %vm416_vm0, %v415_v0  ;;  %380 = vmatpush3.bf16.msra.mxu0 %v401_v10 }
  0x14   :  { %381 = vmatprep.subr.bf16.mxu0 %v415_v0 }
  0x17   :  { %382 = vmatpush3.bf16.msra.mxu0 %v402_v11 }
  0x18   :  { %383 = vmatprep.subr.bf16.mxu0 %v415_v0 }
  0x1b   :  { %384 = vmatpush3.bf16.msra.mxu0 %v403_v20 }
  0x1c   :  { %385 = vmatprep.subr.bf16.mxu0 %v415_v0 }
  0x1f   :  { %386 = vmatpush3.bf16.msra.mxu0 %v404_v21 }
  0xe5   :  { %v105_v13 = vpop.f32.mrb[0].mxu0 }
  0xe6   :  { %v106_v14 = vadd.f32 %v321_v12, %v105_v13  ;;  %v365_v15 = vpop.f32.mrb[1].mxu0 }
  0xe7   :  { %v108_v16 = vpop.f32.mrb[2].mxu0 }
  0xe8   :  { %v111_v17 = vmax.f32 %v106_v14, 0.0  ;;  %v366_v18 = vpop.f32.mrb[3].mxu0 }
  0xea   :  { %v112_v19 = vpack.c.bf16 %v111_v17, %v111_v17 }
  0xec   :  { %376 = vmatmul.mubr.msk.bf16.vlgmr.msra.gmra.mrb[0].mxu1 %vm67_vm1, %v112_v19 }
 0x1bf   :  { %v189_v23 = vpop.f32.mrb[0].mxu1 }
 0x1c0   :  { %v190_v24 = vadd.f32 %v327_v22, %v189_v23  ;;  %v377_v25 = vpop.f32.mrb[1].mxu1 }
 0x1c1   :  { %v192_v26 = vpop.f32.mrb[2].mxu1 }
 0x1c2   :  { %v195_v27 = vmax.f32 %v190_v24, 0.0  ;;  %v378_v28 = vpop.f32.mrb[3].mxu1 }
 0x1c4   :  { %v196_v29 = vpack.c.bf16 %v195_v27, %v195_v27 }
 0x1c6   :  { %388 = vmatmul.mubr.msk.bf16.vlgmr.msra.gmra.mrb[4].mxu0 %vm67_vm1, %v196_v29 }
 0x299   :  { %v273_v31 = vpop.f32.mrb[4].mxu0 }
 0x29a   :  { %v274_v32 = vadd.f32 %v333_v30, %v273_v31  ;;  %v389_v33 = vpop.f32.mrb[5].mxu0 }
 0x29b   :  { %v276_v34 = vpop.f32.mrb[6].mxu0 }
 0x29c   :  { %v390_v35 = vpop.f32.mrb[7].mxu0  ;;  %v296_v36 = vand.u32 2147483647, %v274_v32  ;;  %v339_v39 = vmul.f32 -1.442695, %v274_v32  ;;  %v293_v52 = vmax.f32 %v274_v32, 0.0  ;;  %vm294_vm5 = vcmp.ne.f32.partialorder %v274_v32, %v274_v32 }
 0x29e   :  { %v297_v37 = vsub.f32 0.0, %v296_v36 }
 0x2a0   :  { %v298_v38 = vmul.f32 1.442695, %v297_v37 }
 0x2a2   :  { %405 = vpow2.f32 %v298_v38 }
 0x2a3   :  { %407 = vpow2.f32 %v339_v39 }
 0x2ac   :  { %v406_v40 = vpop.eup %405 }
 0x2ad   :  { %v300_v41 = vadd.f32 1.0, %v406_v40  ;;  %v408_v42 = vpop.eup %407  ;;  %v303_v43 = vmul.f32 -0.5, %v406_v40  ;;  %v306_v47 = vand.u32 2147483647, %v406_v40 }
 0x2ae   :  { %v289_v44 = vadd.f32 1.0, %v408_v42 }
 0x2af   :  { %409 = vlog2.f32 %v300_v41  ;;  %v304_v46 = vadd.f32 1.0, %v303_v43  ;;  %vm307_vm2 = vcmp.lt.f32.partialorder %v306_v47, 0.0004427343 }
 0x2b0   :  { %411 = vrcp.f32 %v289_v44 }
 0x2b1   :  { %413 = vtanh.f32 %v274_v32  ;;  %v305_v51 = vmul.f32 %v406_v40, %v304_v46 }
 0x2b9   :  { %v410_v48 = vpop.eup %409 }
 0x2ba   :  { %v302_v50 = vmul.f32 0.6931472, %v410_v48  ;;  %v412_v57 = vpop.eup %411 }
 0x2bb   :  { %v414_v59 = vpop.eup %413 }
 0x2bc   :  { %v308_v53 = vsel %vm307_vm2, %v305_v51, %v302_v50 }
 0x2bd   :  { %v309_v54 = vadd.f32 %v308_v53, %v293_v52 }
 0x2bf   :  { %v310_v55 = vsel %vm294_vm5, %v274_v32, %v309_v54 }
 0x2c0   :  { %v311_v56 = vadd.f32 0.001, %v310_v55 }
 0x2c2   :  { %v312_v58 = vsel %vm292_vm6, %v274_v32, %v311_v56 }
 0x2c3   :  { %v313_v60 = vsel %vm285_vm7, %v412_v57, %v312_v58 }
 0x2c4   :  { %v314_v61 = vsel %vm281_vm8, %v414_v59, %v313_v60 }
 0x2c5   :  { %316 = vst.msk [vmem:[%s521_s7] sm:$0x3] %vm315_vm9, %v314_v61 }

</bundles_post_ra>
